<compile_context>
chip_gen: v5e
topology: v5e:2x2
jax: 0.10.0
libtpu: 0.0.40
codegen_flags: <defaults>
</compile_context>

<pallas_src>
import jax
import jax.numpy as jnp
from jax.experimental import pallas as pl
from jax.experimental.pallas import tpu as pltpu

D_IN, D_H1, D_H2, D_OUT = 6, 64, 32, 15

DEFAULT_TILE_B = 32768            # rows (lanes) per grid step
VMEM_LIMIT_BYTES = 48 * 1024 * 1024


def _mlp_kernel(x_ref, w1_ref, b1_ref, w2_ref, b2_ref, w3_ref, b3_ref, o_ref):
    # One batch tile (lane-dense) per grid step; weights/biases VMEM-resident.
    xt = x_ref[...]                                                   # (6, tile_b)
    h1 = jnp.dot(w1_ref[...], xt, preferred_element_type=jnp.float32) + b1_ref[...]
    h1 = jnp.maximum(h1, 0.0)                                         # (64, tile_b)
    h2 = jnp.dot(w2_ref[...], h1, preferred_element_type=jnp.float32) + b2_ref[...]
    h2 = jnp.maximum(h2, 0.0)                                         # (32, tile_b)
    out = jnp.dot(w3_ref[...], h2, preferred_element_type=jnp.float32) + b3_ref[...]
    o_ref[...] = out.astype(o_ref.dtype)                              # (15, tile_b)


def _round_up(n, m):
    return ((n + m - 1) // m) * m


def _choose_tile_b(batch, requested):
    """Pick a lane-tile size: multiple of 128, or exactly the full batch."""
    requested = max(128, (requested // 128) * 128)
    # v7x megacore: keep at least 2 grid steps when the batch is big enough so
    # dimension_semantics=("parallel",) can shard across both TensorCores.
    if batch > 2 * 128:
        half = _round_up(-(-batch // 2), 128)   # ceil(batch/2) rounded to 128
        requested = min(requested, half)
    if requested >= batch:
        return batch        # single block equal to the full dim (always legal)
    return requested        # multiple of 128; partial last block is masked


def surrogate_nn_forward(x, params, *, tile_b=DEFAULT_TILE_B):
    """x: (B, 6) float32. params: w1(64,6), b1(64,1), w2(32,64), b2(32,1),
    w3(15,32), b3(15,1).  Returns (B, 15) float32."""
    w1, b1 = params["w1"], params["b1"]
    w2, b2 = params["w2"], params["b2"]
    w3, b3 = params["w3"], params["b3"]
    B = x.shape[0]

    tile_b = _choose_tile_b(B, tile_b)
    grid = (pl.cdiv(B, tile_b),)

    # Lane-dense layout: batch on the 128-wide lane axis.
    x_t = x.T                                    # (6, B)

    # Weights/biases: full block, constant index map -> resident in VMEM.
    def resident(shape):
        return pl.BlockSpec(shape, lambda i: tuple(0 for _ in shape))

    flops = 2 * B * (D_IN * D_H1 + D_H1 * D_H2 + D_H2 * D_OUT)
    weight_bytes = sum(int(a.size) * a.dtype.itemsize
                       for a in (w1, b1, w2, b2, w3, b3))
    bytes_accessed = B * (D_IN + D_OUT) * x.dtype.itemsize + weight_bytes

    out_t = pl.pallas_call(
        _mlp_kernel,
        out_shape=jax.ShapeDtypeStruct((D_OUT, B), jnp.float32),
        grid=grid,
        in_specs=[
            pl.BlockSpec((D_IN, tile_b), lambda i: (0, i)),
            resident(w1.shape), resident(b1.shape),
            resident(w2.shape), resident(b2.shape),
            resident(w3.shape), resident(b3.shape),
        ],
        out_specs=pl.BlockSpec((D_OUT, tile_b), lambda i: (0, i)),
        compiler_params=pltpu.CompilerParams(
            dimension_semantics=("parallel",),      # batch tiles are independent
            vmem_limit_bytes=VMEM_LIMIT_BYTES,      # cover v5e's 16 MiB default
        ),
        cost_estimate=pl.CostEstimate(
            flops=flops, transcendentals=0, bytes_accessed=bytes_accessed
        ),
    )(x_t, w1, b1, w2, b2, w3, b3)

    return out_t.T                               # (B, 15)


def init_params(key):
    """PyTorch nn.Linear-style init: weights (out,in), biases (out,1),
    uniform +/- 1/sqrt(fan_in)."""
    ks = jax.random.split(key, 6)

    def linear(kw, kb, fan_in, fan_out):
        bound = 1.0 / jnp.sqrt(float(fan_in))
        w = jax.random.uniform(kw, (fan_out, fan_in), jnp.float32, -bound, bound)
        b = jax.random.uniform(kb, (fan_out, 1), jnp.float32, -bound, bound)
        return w, b

    w1, b1 = linear(ks[0], ks[1], D_IN, D_H1)
    w2, b2 = linear(ks[2], ks[3], D_H1, D_H2)
    w3, b3 = linear(ks[4], ks[5], D_H2, D_OUT)
    return {"w1": w1, "b1": b1, "w2": w2, "b2": b2, "w3": w3, "b3": b3}


def reference_forward(x, params):
    """Pure-JAX reference mirroring PyTorch: y = x @ W.T + b."""
    h1 = jnp.maximum(x @ params["w1"].T + params["b1"].T, 0.0)
    h2 = jnp.maximum(h1 @ params["w2"].T + params["b2"].T, 0.0)
    return h2 @ params["w3"].T + params["b3"].T


def _check(x, params, **kw):
    out = jax.block_until_ready(surrogate_nn_forward(x, params, **kw))
    ref = reference_forward(x, params)
    assert out.shape == ref.shape
    assert jnp.allclose(out, ref, atol=1e-4, rtol=1e-4), (
        float(jnp.max(jnp.abs(out - ref))))
    return out


if __name__ == "__main__":
    key = jax.random.PRNGKey(0)
    k_param, k1, k2, k3, k4 = jax.random.split(key, 5)
    params = init_params(k_param)

    # 1) Tiny batch: single full block (block last-dim == full array dim).
    _check(jax.random.normal(k1, (8, D_IN), dtype=jnp.float32), params)

    # 2) Multi-tile batch: grid=(3,) at tile_b=128, exact tiles.
    _check(jax.random.normal(k2, (384, D_IN), dtype=jnp.float32), params, tile_b=128)

    # 3) Ragged batch: partial final lane-tile (masked writeback path).
    _check(jax.random.normal(k3, (200, D_IN), dtype=jnp.float32), params, tile_b=128)

    # 4) Default tile with the v7x >=2-step cap engaged: tile_b -> 512, grid=(2,).
    _check(jax.random.normal(k4, (1000, D_IN), dtype=jnp.float32), params)

    print("KERNEL_OK")
</pallas_src>

<mosaic_0001>
module attributes {stable_mosaic.version = 11 : i64} {
  func.func @_mlp_kernel(%arg0: i32, %arg1: memref<6x8xf32, #tpu.memory_space<vmem>>, %arg2: memref<64x6xf32, #tpu.memory_space<vmem>>, %arg3: memref<64x1xf32, #tpu.memory_space<vmem>>, %arg4: memref<32x64xf32, #tpu.memory_space<vmem>>, %arg5: memref<32x1xf32, #tpu.memory_space<vmem>>, %arg6: memref<15x32xf32, #tpu.memory_space<vmem>>, %arg7: memref<15x1xf32, #tpu.memory_space<vmem>>, %arg8: memref<15x8xf32, #tpu.memory_space<vmem>>) attributes {dimension_semantics = [#tpu.dimension_semantics<parallel>], iteration_bounds = array<i64: 1>, scalar_prefetch = 0 : i64, scratch_operands = 0 : i64, tpu.core_type = #tpu.core_type<tc>, window_params = [{transform_indices = @transform_0, window_bounds = array<i64: 6, 8>}, {pipeline_mode = #tpu.pipeline_mode<synchronous>, transform_indices = @transform_1, window_bounds = array<i64: 64, 6>}, {pipeline_mode = #tpu.pipeline_mode<synchronous>, transform_indices = @transform_2, window_bounds = array<i64: 64, 1>}, {pipeline_mode = #tpu.pipeline_mode<synchronous>, transform_indices = @transform_3, window_bounds = array<i64: 32, 64>}, {pipeline_mode = #tpu.pipeline_mode<synchronous>, transform_indices = @transform_4, window_bounds = array<i64: 32, 1>}, {pipeline_mode = #tpu.pipeline_mode<synchronous>, transform_indices = @transform_5, window_bounds = array<i64: 15, 32>}, {pipeline_mode = #tpu.pipeline_mode<synchronous>, transform_indices = @transform_6, window_bounds = array<i64: 15, 1>}, {transform_indices = @transform_7, window_bounds = array<i64: 15, 8>}]} {
    %c0 = arith.constant 0 : index
    %c0_0 = arith.constant 0 : index
    %0 = vector.load %arg1[%c0, %c0_0] : memref<6x8xf32, #tpu.memory_space<vmem>>, vector<6x8xf32>
    %c0_1 = arith.constant 0 : index
    %c0_2 = arith.constant 0 : index
    %1 = vector.load %arg2[%c0_1, %c0_2] : memref<64x6xf32, #tpu.memory_space<vmem>>, vector<64x6xf32>
    %cst = arith.constant dense<0.000000e+00> : vector<64x8xf32>
    %2 = tpu.matmul %1, %0, %cst {dimension_numbers = #tpu.dot_dimension_numbers<[1], [0], [0], [1], [0, 0, 1, 1], [], []>} : vector<64x6xf32>, vector<6x8xf32>, vector<64x8xf32> -> vector<64x8xf32>
    %c0_3 = arith.constant 0 : index
    %c0_4 = arith.constant 0 : index
    %3 = vector.load %arg3[%c0_3, %c0_4] : memref<64x1xf32, #tpu.memory_space<vmem>>, vector<64x1xf32>
    %4 = vector.broadcast %3 : vector<64x1xf32> to vector<64x8xf32>
    %5 = arith.addf %2, %4 : vector<64x8xf32>
    %cst_5 = arith.constant 0.000000e+00 : f32
    %6 = vector.broadcast %cst_5 : f32 to vector<64x8xf32>
    %7 = arith.maximumf %5, %6 : vector<64x8xf32>
    %c0_6 = arith.constant 0 : index
    %c0_7 = arith.constant 0 : index
    %8 = vector.load %arg4[%c0_6, %c0_7] : memref<32x64xf32, #tpu.memory_space<vmem>>, vector<32x64xf32>
    %cst_8 = arith.constant dense<0.000000e+00> : vector<32x8xf32>
    %9 = tpu.matmul %8, %7, %cst_8 {dimension_numbers = #tpu.dot_dimension_numbers<[1], [0], [0], [1], [0, 0, 1, 1], [], []>} : vector<32x64xf32>, vector<64x8xf32>, vector<32x8xf32> -> vector<32x8xf32>
    %c0_9 = arith.constant 0 : index
    %c0_10 = arith.constant 0 : index
    %10 = vector.load %arg5[%c0_9, %c0_10] : memref<32x1xf32, #tpu.memory_space<vmem>>, vector<32x1xf32>
    %11 = vector.broadcast %10 : vector<32x1xf32> to vector<32x8xf32>
    %12 = arith.addf %9, %11 : vector<32x8xf32>
    %cst_11 = arith.constant 0.000000e+00 : f32
    %13 = vector.broadcast %cst_11 : f32 to vector<32x8xf32>
    %14 = arith.maximumf %12, %13 : vector<32x8xf32>
    %c0_12 = arith.constant 0 : index
    %c0_13 = arith.constant 0 : index
    %15 = vector.load %arg6[%c0_12, %c0_13] : memref<15x32xf32, #tpu.memory_space<vmem>>, vector<15x32xf32>
    %cst_14 = arith.constant dense<0.000000e+00> : vector<15x8xf32>
    %16 = tpu.matmul %15, %14, %cst_14 {dimension_numbers = #tpu.dot_dimension_numbers<[1], [0], [0], [1], [0, 0, 1, 1], [], []>} : vector<15x32xf32>, vector<32x8xf32>, vector<15x8xf32> -> vector<15x8xf32>
    %c0_15 = arith.constant 0 : index
    %c0_16 = arith.constant 0 : index
    %17 = vector.load %arg7[%c0_15, %c0_16] : memref<15x1xf32, #tpu.memory_space<vmem>>, vector<15x1xf32>
    %18 = vector.broadcast %17 : vector<15x1xf32> to vector<15x8xf32>
    %19 = arith.addf %16, %18 : vector<15x8xf32>
    %c0_17 = arith.constant 0 : index
    %c0_18 = arith.constant 0 : index
    %20 = vector.load %arg8[%c0_17, %c0_18] : memref<15x8xf32, #tpu.memory_space<vmem>>, vector<15x8xf32>
    tpu.vector_store %arg8[%c0_17, %c0_18], %19 {strides = array<i32>} : memref<15x8xf32, #tpu.memory_space<vmem>>, vector<15x8xf32>,
    return
  }
  func.func @transform_0(%arg0: i32) -> (i32, i32) {
    %c0_i32 = arith.constant 0 : i32
    %c0_i32_0 = arith.constant 0 : i32
    return %c0_i32, %arg0 : i32, i32
  }
  func.func @transform_1(%arg0: i32) -> (i32, i32) {
    %c0_i32 = arith.constant 0 : i32
    %c0_i32_0 = arith.constant 0 : i32
    %c0_i32_1 = arith.constant 0 : i32
    return %c0_i32, %c0_i32_0 : i32, i32
  }
  func.func @transform_2(%arg0: i32) -> (i32, i32) {
    %c0_i32 = arith.constant 0 : i32
    %c0_i32_0 = arith.constant 0 : i32
    %c0_i32_1 = arith.constant 0 : i32
    return %c0_i32, %c0_i32_0 : i32, i32
  }
  func.func @transform_3(%arg0: i32) -> (i32, i32) {
    %c0_i32 = arith.constant 0 : i32
    %c0_i32_0 = arith.constant 0 : i32
    %c0_i32_1 = arith.constant 0 : i32
    return %c0_i32, %c0_i32_0 : i32, i32
  }
  func.func @transform_4(%arg0: i32) -> (i32, i32) {
    %c0_i32 = arith.constant 0 : i32
    %c0_i32_0 = arith.constant 0 : i32
    %c0_i32_1 = arith.constant 0 : i32
    return %c0_i32, %c0_i32_0 : i32, i32
  }
  func.func @transform_5(%arg0: i32) -> (i32, i32) {
    %c0_i32 = arith.constant 0 : i32
    %c0_i32_0 = arith.constant 0 : i32
    %c0_i32_1 = arith.constant 0 : i32
    return %c0_i32, %c0_i32_0 : i32, i32
  }
  func.func @transform_6(%arg0: i32) -> (i32, i32) {
    %c0_i32 = arith.constant 0 : i32
    %c0_i32_0 = arith.constant 0 : i32
    %c0_i32_1 = arith.constant 0 : i32
    return %c0_i32, %c0_i32_0 : i32, i32
  }
  func.func @transform_7(%arg0: i32) -> (i32, i32) {
    %c0_i32 = arith.constant 0 : i32
    %c0_i32_0 = arith.constant 0 : i32
    return %c0_i32, %arg0 : i32, i32
  }
}

</mosaic_0001>

<bundles_post_ra>
// kernel: tpu_custom_call.1
= control target key start
LH: loop header
LB: loop body
LE: loop exit
PB: predicated region body
PF: predicated region fallthrough
CT: control target
= control target key end

     0   :  { %vm108_vm0 = vcmask 1045504   ;;  %v315_v0 = vmov 0   ;;  %vm83_vm1 = vcmask 48128   ;;  %vm189_vm2 = vcmask 523264   ;;  %s457_s2 = inlined_call_operand.vmem [shape: f32[64,1], index: 2, kind: input, shape index: {}]   ;;  %s458_s0 = inlined_call_operand.vmem [shape: f32[6,8], index: 0, kind: input, shape index: {}]   ;;  %s459_s1 = inlined_call_operand.vmem [shape: f32[64,6], index: 1, kind: input, shape index: {}]   ;;  %s460_s4 = inlined_call_operand.vmem [shape: f32[32,1], index: 4, kind: input, shape index: {}]   ;;  %s461_s6 = inlined_call_operand.vmem [shape: f32[15,1], index: 6, kind: input, shape index: {}]   ;;  %s462_s3 = inlined_call_operand.vmem [shape: f32[32,64], index: 3, kind: input, shape index: {}]   ;;  %s463_s5 = inlined_call_operand.vmem [shape: f32[15,32], index: 5, kind: input, shape index: {}]   ;;  %s464_s7 = inlined_call_operand.vmem [shape: f32[15,8], index: 7, kind: output, shape index: {}]  }
   0x1   :  { %313 = vset.pattern.permute.xlu1 %v315_v0  ;;  %312 = vset.pattern.permute.xlu0 %v315_v0  ;;  %v42_v1 = vld [vmem:[%s457_s2 + $0x38] sm:$0xff]  ;;  %v40_v2 = vld [vmem:[%s457_s2 + $0x28] sm:$0xff]  ;;  %v26_v3 = vld [vmem:[%s458_s0] sm:$0x3f]  ;;  %vm249_vm3 = vcmask 261120   ;;  %vm279_vm4 = vcmask 64512  }
   0x2   :  { %80 = vperm.xlu0 %312, %v42_v1   ;;  %70 = vperm.xlu1 %313, %v40_v2   ;;  %v27_v4 = vld [vmem:[%s459_s1] sm:$0xff]  ;;  %v32_v5 = vld [vmem:[%s459_s1 + $0x28] sm:$0xff]  ;;  %v41_v6 = vld [vmem:[%s457_s2 + $0x30] sm:$0xff]  ;;  %vm281_vm5 = vcmask 63488  }
   0x3   :  { %287 = vmatpush.msk.msra.mxu0 %vm108_vm0, %v26_v3  ;;  %302 = vmatpush.msk.msra.mxu3 %vm108_vm0, %v26_v3  ;;  %v39_v7 = vld [vmem:[%s457_s2 + $0x20] sm:$0xff]  ;;  %v38_v8 = vld [vmem:[%s457_s2 + $0x18] sm:$0xff]  ;;  %v28_v9 = vld [vmem:[%s459_s1 + $0x8] sm:$0xff] }
   0x4   :  { %288 = vmatmul.msk.f32.vlgmr.msra.gmra.mxu0 %vm83_vm1, %v27_v4  ;;  %293 = vmatmul.msk.f32.vlgmr.msra.gmra.mxu3 %vm83_vm1, %v32_v5  ;;  %v33_v10 = vld [vmem:[%s459_s1 + $0x30] sm:$0xff]  ;;  %v36_v12 = vld [vmem:[%s457_s2 + $0x8] sm:$0xff]  ;;  %v35_v13 = vld [vmem:[%s457_s2] sm:$0xff] }
   0x5   :  { %314 = vset.pattern.permute.xlu2 %v315_v0  ;;  %v37_v11 = vld [vmem:[%s457_s2 + $0x10] sm:$0xff]  ;;  %v34_v15 = vld [vmem:[%s459_s1 + $0x38] sm:$0xff]  ;;  %v166_v18 = vld [vmem:[%s460_s4 + $0x8] sm:$0xff] }
   0x6   :  { %60 = vperm.xlu2 %314, %v38_v8   ;;  %v29_v14 = vld [vmem:[%s459_s1 + $0x10] sm:$0xff]  ;;  %v168_v16 = vld [vmem:[%s460_s4 + $0x18] sm:$0xff]  ;;  %v165_v20 = vld [vmem:[%s460_s4] sm:$0xff] }
   0x7   :  { %v167_v17 = vld [vmem:[%s460_s4 + $0x10] sm:$0xff]  ;;  %v30_v19 = vld [vmem:[%s459_s1 + $0x18] sm:$0xff]  ;;  %v237_v21 = vld [vmem:[%s461_s6] sm:$0xff] }
   0x8   :  { %v238_v22 = vld [vmem:[%s461_s6 + $0x8] sm:$0x7f]  ;;  %v31_v23 = vld [vmem:[%s459_s1 + $0x20] sm:$0xff]  ;;  %v164_v57 = vld [vmem:[%s462_s3 + $0x18] sm:$0xff] }
   0x9   :  { %v161_v56 = vld [vmem:[%s462_s3] sm:$0xff]  ;;  %v162_v58 = vld [vmem:[%s462_s3 + $0x8] sm:$0xff]  ;;  %v163_v59 = vld [vmem:[%s462_s3 + $0x10] sm:$0xff] }
   0xa   :  { %75 = vperm.xlu0 %312, %v41_v6   ;;  %65 = vperm.xlu1 %313, %v39_v7  }
   0xc   :  { %289 = vmatmul.msk.f32.gmra.mxu0 %vm83_vm1, %v28_v9  ;;  %294 = vmatmul.msk.f32.gmra.mxu3 %vm83_vm1, %v33_v10 }
   0xe   :  { %55 = vperm.xlu2 %314, %v37_v11  }
  0x12   :  { %50 = vperm.xlu0 %312, %v36_v12   ;;  %45 = vperm.xlu1 %313, %v35_v13   ;;  %v235_v12 = vld [vmem:[%s463_s5] sm:$0xff]  ;;  %v236_v13 = vld [vmem:[%s463_s5 + $0x8] sm:$0x7f] }
  0x14   :  { %290 = vmatmul.msk.f32.gmra.mxu0 %vm83_vm1, %v29_v14  ;;  %295 = vmatmul.msk.f32.gmra.mxu3 %vm83_vm1, %v34_v15 }
  0x16   :  { %186 = vperm.xlu2 %314, %v168_v16  }
  0x1a   :  { %181 = vperm.xlu0 %312, %v167_v17   ;;  %176 = vperm.xlu1 %313, %v166_v18  }
  0x1c   :  { %291 = vmatmul.msk.f32.gmra.mxu0 %vm83_vm1, %v30_v19 }
  0x1e   :  { %171 = vperm.xlu2 %314, %v165_v20  }
  0x22   :  { %241 = vperm.xlu0 %312, %v237_v21   ;;  %246 = vperm.xlu1 %313, %v238_v22  }
  0x24   :  { %292 = vmatmul.msk.f32.gmra.mxu0 %vm83_vm1, %v31_v23 }
  0x60   :  { %v61_v35 = vpop.permute.xlu2 %60 }
  0x68   :  { %v56_v45 = vpop.permute.xlu2 %55 }
  0x70   :  { %v187_v61 = vpop.permute.xlu2 %186 }
  0x74   :  { %v81_v27 = vpop.permute.xlu0 %80  ;;  %v71_v29 = vpop.permute.xlu1 %70 }
  0x78   :  { %v172_v7 = vpop.permute.xlu2 %171 }
  0x7c   :  { %v76_v31 = vpop.permute.xlu0 %75  ;;  %v66_v39 = vpop.permute.xlu1 %65 }
  0x81   :  { %v129_v24 = vpop.f32.mrf.mxu0 }
  0x84   :  { %v51_v48 = vpop.permute.xlu0 %50  ;;  %v46_v49 = vpop.permute.xlu1 %45 }
  0x85   :  { %v130_v52 = vadd.f32 %v129_v24, %v46_v49 }
  0x87   :  { %v144_v25 = vpop.f32.mrf.mxu3  ;;  %v153_v55 = vmax.f32 %v130_v52, 0.0 }
  0x88   :  { %v145_v37 = vadd.f32 %v144_v25, %v71_v29 }
  0x89   :  { %v132_v26 = vpop.f32.mrf.mxu0 }
  0x8a   :  { %v158_v41 = vmax.f32 %v145_v37, 0.0  ;;  %v133_v50 = vadd.f32 %v132_v26, %v51_v48 }
  0x8c   :  { %v154_v54 = vmax.f32 %v133_v50, 0.0  ;;  %v182_v2 = vpop.permute.xlu0 %181  ;;  %v177_v3 = vpop.permute.xlu1 %176 }
  0x8f   :  { %v147_v28 = vpop.f32.mrf.mxu3 }
  0x90   :  { %v148_v33 = vadd.f32 %v147_v28, %v76_v31 }
  0x91   :  { %v135_v30 = vpop.f32.mrf.mxu0 }
  0x92   :  { %v159_v40 = vmax.f32 %v148_v33, 0.0  ;;  %v136_v46 = vadd.f32 %v135_v30, %v56_v45 }
  0x94   :  { %v155_v53 = vmax.f32 %v136_v46, 0.0  ;;  %v242_v14 = vpop.permute.xlu0 %241  ;;  %v247_v17 = vpop.permute.xlu1 %246 }
  0x97   :  { %v150_v32 = vpop.f32.mrf.mxu3 }
  0x98   :  { %v151_v34 = vadd.f32 %v150_v32, %v81_v27 }
  0x99   :  { %v138_v36 = vpop.f32.mrf.mxu0 }
  0x9a   :  { %v160_v38 = vmax.f32 %v151_v34, 0.0  ;;  %v139_v43 = vadd.f32 %v138_v36, %v61_v35 }
  0x9c   :  { %210 = vmatpush.msra.mxu1 %v160_v38  ;;  %303 = vmatpush.msra.mxu2 %v160_v38  ;;  %v156_v51 = vmax.f32 %v139_v43, 0.0 }
  0x9e   :  { %211 = vmatpush.msra.mxu1 %v159_v40  ;;  %304 = vmatpush.msra.mxu2 %v159_v40 }
  0xa0   :  { %212 = vmatpush.msra.mxu1 %v158_v41  ;;  %305 = vmatpush.msra.mxu2 %v158_v41 }
  0xa1   :  { %v141_v42 = vpop.f32.mrf.mxu0 }
  0xa2   :  { %v142_v44 = vadd.f32 %v141_v42, %v66_v39 }
  0xa4   :  { %v157_v47 = vmax.f32 %v142_v44, 0.0 }
  0xa6   :  { %213 = vmatpush.msra.mxu1 %v157_v47  ;;  %306 = vmatpush.msra.mxu2 %v157_v47 }
  0xa8   :  { %214 = vmatpush.msra.mxu1 %v156_v51  ;;  %307 = vmatpush.msra.mxu2 %v156_v51 }
  0xaa   :  { %215 = vmatpush.msra.mxu1 %v155_v53  ;;  %308 = vmatpush.msra.mxu2 %v155_v53 }
  0xac   :  { %216 = vmatpush.msra.mxu1 %v154_v54  ;;  %309 = vmatpush.msra.mxu2 %v154_v54 }
  0xae   :  { %217 = vmatpush.msra.mxu1 %v153_v55  ;;  %310 = vmatpush.msra.mxu2 %v153_v55 }
  0xaf   :  { %296 = vmatmul.msk.f32.vlgmr.msra.gmra.mxu1 %vm189_vm2, %v161_v56  ;;  %299 = vmatmul.msk.f32.vlgmr.msra.gmra.mxu2 %vm189_vm2, %v164_v57 }
  0xb7   :  { %297 = vmatmul.msk.f32.gmra.mxu1 %vm189_vm2, %v162_v58 }
  0xbf   :  { %298 = vmatmul.msk.f32.gmra.mxu1 %vm189_vm2, %v163_v59 }
 0x12c   :  { %v219_v60 = vpop.f32.mrf.mxu1 }
 0x12d   :  { %v220_v8 = vadd.f32 %v219_v60, %v172_v7 }
 0x12f   :  { %v231_v11 = vmax.f32 %v220_v8, 0.0 }
 0x132   :  { %v228_v62 = vpop.f32.mrf.mxu2 }
 0x133   :  { %v229_v63 = vadd.f32 %v228_v62, %v187_v61 }
 0x134   :  { %v222_v0 = vpop.f32.mrf.mxu1 }
 0x135   :  { %v234_v1 = vmax.f32 %v229_v63, 0.0  ;;  %v223_v5 = vadd.f32 %v222_v0, %v177_v3 }
 0x137   :  { %268 = vmatpush.msrb.mxu2 %v234_v1  ;;  %v232_v10 = vmax.f32 %v223_v5, 0.0 }
 0x13c   :  { %v225_v4 = vpop.f32.mrf.mxu1 }
 0x13d   :  { %v226_v6 = vadd.f32 %v225_v4, %v182_v2 }
 0x13f   :  { %v233_v9 = vmax.f32 %v226_v6, 0.0 }
 0x141   :  { %269 = vmatpush.msrb.mxu2 %v233_v9 }
 0x143   :  { %270 = vmatpush.msrb.mxu2 %v232_v10 }
 0x145   :  { %271 = vmatpush.msrb.mxu2 %v231_v11 }
 0x146   :  { %300 = vmatmul.msk.f32.vlgmr.msrb.gmra.mxu2 %vm249_vm3, %v235_v12 }
 0x14e   :  { %301 = vmatmul.msk.f32.gmra.mxu2 %vm249_vm3, %v236_v13 }
 0x1c9   :  { %v273_v15 = vpop.f32.mrf.mxu2 }
 0x1ca   :  { %v274_v16 = vadd.f32 %v273_v15, %v242_v14 }
 0x1cc   :  { %280 = vst.msk [vmem:[%s464_s7] sm:$0xff] %vm279_vm4, %v274_v16 }
 0x1d1   :  { %v276_v18 = vpop.f32.mrf.mxu2 }
 0x1d2   :  { %v277_v19 = vadd.f32 %v276_v18, %v247_v17 }
 0x1d4   :  { %282 = vst.msk [vmem:[%s464_s7 + $0x8] sm:$0x7f] %vm281_vm5, %v277_v19 }

</bundles_post_ra>
